<compile_context>
chip_gen: v7x
topology: tpu7x:2x2x1
jax: 0.10.0
libtpu: 0.0.40
codegen_flags: <defaults>
</compile_context>

<pallas_src>
import functools

import jax
import jax.numpy as jnp
from jax.experimental import pallas as pl
from jax.experimental.pallas import tpu as pltpu


def _mlp_kernel(x_ref, w1_ref, b1_ref, w2_ref, b2_ref, o_ref, h_ref):
    # x_ref:  (TM, E)     row tile of the (flattened) input, compute dtype
    # w1_ref: (E, H)      fc1 weight, transposed vs. PyTorch (H, E)  [resident]
    # b1_ref: (1, H)      fc1 bias (f32)                             [resident]
    # w2_ref: (H, TN)     fc2 weight slab for this vocab tile
    # b2_ref: (1, TN)     fc2 bias slab (f32)
    # o_ref:  (TM, TN)    output tile
    # h_ref:  (TM, H)     scratch holding relu(x@w1+b1) in the compute dtype

    # fc1 only once per row tile.  Correct ONLY because the vocab axis
    # (program_id(1)) is the innermost, sequential ("arbitrary") grid axis —
    # do not mark it "parallel" or reorder the grid without removing this gate.
    @pl.when(pl.program_id(1) == 0)
    def _():
        h = jnp.dot(x_ref[...], w1_ref[...], preferred_element_type=jnp.float32)
        # bias add + ReLU in f32, then a single cast into the compute dtype.
        h_ref[...] = jnp.maximum(h + b1_ref[...], 0.0).astype(h_ref.dtype)

    out = jnp.dot(h_ref[...], w2_ref[...], preferred_element_type=jnp.float32)
    o_ref[...] = (out + b2_ref[...]).astype(o_ref.dtype)


def _round_up(n, m):
    return ((n + m - 1) // m) * m


@functools.partial(
    jax.jit, static_argnames=("tile_m", "tile_n", "compute_dtype", "out_dtype"))
def inverse_embedding_mlp(x, w1_t, b1, w2_t, b2, *, tile_m=None, tile_n=None,
                          compute_dtype=jnp.bfloat16, out_dtype=None):
    """x: (..., E) -> (..., V).  w1_t: (E, H), b1: (H,), w2_t: (H, V), b2: (V,).

    compute_dtype: dtype of the matmul inputs (default bf16 for MXU rate);
      accumulation / bias add / ReLU stay in f32.
    out_dtype: output dtype (default: x.dtype).  Use bf16 for large-V logits.
    """
    orig_shape = x.shape
    E = orig_shape[-1]
    H = w1_t.shape[1]
    V = w2_t.shape[1]

    compute_dtype = jnp.dtype(compute_dtype if compute_dtype is not None else x.dtype)
    out_dtype = jnp.dtype(out_dtype if out_dtype is not None else x.dtype)
    cbytes = compute_dtype.itemsize
    obytes = out_dtype.itemsize

    x2d = x.reshape(-1, E).astype(compute_dtype)
    M = x2d.shape[0]
    w1c = w1_t.astype(compute_dtype)
    w2c = w2_t.astype(compute_dtype)
    b1_2d = b1.astype(jnp.float32).reshape(1, H)
    b2_2d = b2.astype(jnp.float32).reshape(1, V)

    # Row tile: up to 512 rows (v6e/v7x MXU + grid overhead amortization);
    # round to 16 for 16-bit sublane packing, 8 for f32.
    rnd = 16 if cbytes <= 2 else 8
    if tile_m is None:
        tile_m = min(512, _round_up(M, rnd))
    # Vocab tile: full V when small; a large lane-dense slab otherwise.
    if tile_n is None:
        if V <= 2048:
            tile_n = V
        else:
            tile_n = 2048 if cbytes <= 2 else 1024

    grid_m = pl.cdiv(M, tile_m)
    grid_n = pl.cdiv(V, tile_n)

    # VMEM footprint: double-buffered pipelined slabs, single-buffered w1/b1
    # (grid-invariant), double-buffered output tile, plus the fc1 scratch.
    vmem_bytes = (
        2 * tile_m * E * cbytes          # x row tile
        + E * H * cbytes                 # w1 (Buffered(1): never re-fetched)
        + H * 4                          # b1
        + 2 * H * tile_n * cbytes        # w2 vocab slab
        + 2 * tile_n * 4                 # b2 vocab slab
        + 2 * tile_m * tile_n * obytes   # output tile
        + tile_m * H * cbytes            # h scratch (compute dtype)
    )
    # Headroom for compiler-internal scratch; stay within v7x's 64 MiB per TC.
    vmem_limit = min(max(int(vmem_bytes * 1.25) + (4 << 20), 16 << 20), 64 << 20)

    # Advisory cost estimate for the XLA scheduler.
    bytes_accessed = (
        M * E * cbytes                       # x
        + E * H * cbytes + H * 4             # w1, b1 (read once)
        + grid_m * (H * V * cbytes + V * 4)  # w2, b2 re-streamed per row tile
        + M * V * obytes                     # output
    )
    cost = pl.CostEstimate(
        flops=2 * M * (E * H + H * V),
        transcendentals=0,
        bytes_accessed=int(bytes_accessed),
    )

    out = pl.pallas_call(
        _mlp_kernel,
        out_shape=jax.ShapeDtypeStruct((M, V), out_dtype),
        grid_spec=pltpu.PrefetchScalarGridSpec(
            num_scalar_prefetch=0,
            grid=(grid_m, grid_n),
            in_specs=[
                pl.BlockSpec((tile_m, E), lambda i, j: (i, 0)),   # x row tile
                pl.BlockSpec((E, H), lambda i, j: (0, 0),         # w1^T resident
                             pipeline_mode=pl.Buffered(1)),
                pl.BlockSpec((1, H), lambda i, j: (0, 0),         # b1 resident
                             pipeline_mode=pl.Buffered(1)),
                pl.BlockSpec((H, tile_n), lambda i, j: (0, j)),   # w2^T vocab slab
                pl.BlockSpec((1, tile_n), lambda i, j: (0, j)),   # b2 vocab slab
            ],
            out_specs=pl.BlockSpec((tile_m, tile_n), lambda i, j: (i, j)),
            scratch_shapes=[pltpu.VMEM((tile_m, H), compute_dtype)],  # fc1 acts
        ),
        compiler_params=pltpu.CompilerParams(
            # Vocab axis must remain sequential ("arbitrary") — see kernel gate.
            dimension_semantics=("parallel", "arbitrary"),
            vmem_limit_bytes=vmem_limit,
        ),
        cost_estimate=cost,
    )(x2d, w1c, b1_2d, w2c, b2_2d)

    return out.reshape(*orig_shape[:-1], V)


def init_params(key, embedding_dim, vocab_size, hidden=512, dtype=jnp.float32):
    """Deterministic init mimicking PyTorch nn.Linear defaults (uniform +/- 1/sqrt(fan_in))."""
    k1, k2, k3, k4 = jax.random.split(key, 4)
    bound1 = 1.0 / (embedding_dim ** 0.5)
    bound2 = 1.0 / (hidden ** 0.5)
    # Stored already transposed: (in, out)
    w1_t = jax.random.uniform(k1, (embedding_dim, hidden), dtype, -bound1, bound1)
    b1 = jax.random.uniform(k2, (hidden,), dtype, -bound1, bound1)
    w2_t = jax.random.uniform(k3, (hidden, vocab_size), dtype, -bound2, bound2)
    b2 = jax.random.uniform(k4, (vocab_size,), dtype, -bound2, bound2)
    return w1_t, b1, w2_t, b2


if __name__ == "__main__":
    key = jax.random.PRNGKey(0)
    kx, kx2, kp = jax.random.split(key, 3)

    batch, seq, embedding_dim, vocab_size = 2, 8, 32, 384
    x = jax.random.normal(kx, (batch, seq, embedding_dim), jnp.float32)
    w1_t, b1, w2_t, b2 = init_params(kp, embedding_dim, vocab_size)

    # 1) Default path: bf16 compute (native MXU rate), f32 accumulate/out.
    #    tile_n=128 forces 3 vocab steps so the cached-h reuse is exercised.
    out_bf = jax.block_until_ready(
        inverse_embedding_mlp(x, w1_t, b1, w2_t, b2, tile_n=128))
    xb = x.astype(jnp.bfloat16)
    w1b = w1_t.astype(jnp.bfloat16)
    w2b = w2_t.astype(jnp.bfloat16)
    hb = jnp.maximum(
        jnp.dot(xb, w1b, preferred_element_type=jnp.float32) + b1, 0.0)
    ref_bf = jnp.dot(hb.astype(jnp.bfloat16), w2b,
                     preferred_element_type=jnp.float32) + b2
    assert out_bf.shape == (batch, seq, vocab_size), out_bf.shape
    assert jnp.allclose(out_bf, ref_bf, atol=2e-2, rtol=2e-2), "bf16 mismatch"

    # 2) Full-precision path vs. exact f32 reference.
    out_f32 = jax.block_until_ready(
        inverse_embedding_mlp(x, w1_t, b1, w2_t, b2, tile_n=128,
                              compute_dtype=jnp.float32))
    ref = jnp.maximum(x @ w1_t + b1, 0.0) @ w2_t + b2
    assert jnp.allclose(out_f32, ref, atol=2e-4, rtol=2e-4), "f32 mismatch"

    # 3) Ragged M (3*5 = 15 rows -> partial row tile, no host-side padding).
    x_odd = jax.random.normal(kx2, (3, 5, embedding_dim), jnp.float32)
    out_odd = jax.block_until_ready(
        inverse_embedding_mlp(x_odd, w1_t, b1, w2_t, b2,
                              compute_dtype=jnp.float32))
    ref_odd = jnp.maximum(x_odd @ w1_t + b1, 0.0) @ w2_t + b2
    assert out_odd.shape == (3, 5, vocab_size), out_odd.shape
    assert jnp.allclose(out_odd, ref_odd, atol=2e-4, rtol=2e-4), "ragged mismatch"

    # 4) bf16 output option (large-V logits).
    out_b16 = jax.block_until_ready(
        inverse_embedding_mlp(x, w1_t, b1, w2_t, b2, out_dtype=jnp.bfloat16))
    assert out_b16.dtype == jnp.bfloat16, out_b16.dtype
    assert jnp.allclose(out_b16.astype(jnp.float32), ref_bf,
                        atol=8e-2, rtol=8e-2), "bf16-out mismatch"

    print("KERNEL_OK")
</pallas_src>

<mosaic_0001>
module attributes {stable_mosaic.version = 11 : i64} {
  func.func @_mlp_kernel(%arg0: i32, %arg1: i32, %arg2: memref<16x32xbf16, #tpu.memory_space<vmem>>, %arg3: memref<32x512xbf16, #tpu.memory_space<vmem>>, %arg4: memref<1x512xf32, #tpu.memory_space<vmem>>, %arg5: memref<512x128xbf16, #tpu.memory_space<vmem>>, %arg6: memref<1x128xf32, #tpu.memory_space<vmem>>, %arg7: memref<16x128xf32, #tpu.memory_space<vmem>>, %arg8: memref<16x512xbf16, #tpu.memory_space<vmem>>) attributes {dimension_semantics = [#tpu.dimension_semantics<parallel>, #tpu.dimension_semantics<arbitrary>], iteration_bounds = array<i64: 1, 3>, scalar_prefetch = 0 : i64, scratch_operands = 1 : i64, tpu.core_type = #tpu.core_type<tc>, window_params = [{transform_indices = @transform_0, window_bounds = array<i64: 16, 32>}, {pipeline_mode = #tpu.pipeline_mode<synchronous>, transform_indices = @transform_1, window_bounds = array<i64: 32, 512>}, {pipeline_mode = #tpu.pipeline_mode<synchronous>, transform_indices = @transform_2, window_bounds = array<i64: 1, 512>}, {transform_indices = @transform_3, window_bounds = array<i64: 512, 128>}, {transform_indices = @transform_4, window_bounds = array<i64: 1, 128>}, {transform_indices = @transform_5, window_bounds = array<i64: 16, 128>}]} {
    %c0_i32 = arith.constant 0 : i32
    %0 = arith.cmpi eq, %arg1, %c0_i32 : i32
    %1 = arith.extui %0 : i1 to i32
    %c0_i32_0 = arith.constant 0 : i32
    %2 = arith.cmpi ne, %1, %c0_i32_0 : i32
    scf.if %2 {
      %c0_8 = arith.constant 0 : index
      %c0_9 = arith.constant 0 : index
      %10 = vector.load %arg2[%c0_8, %c0_9] : memref<16x32xbf16, #tpu.memory_space<vmem>>, vector<16x32xbf16>
      %c0_10 = arith.constant 0 : index
      %c0_11 = arith.constant 0 : index
      %11 = vector.load %arg3[%c0_10, %c0_11] : memref<32x512xbf16, #tpu.memory_space<vmem>>, vector<32x512xbf16>
      %cst_12 = arith.constant dense<0.000000e+00> : vector<16x512xf32>
      %12 = tpu.matmul %10, %11, %cst_12 {dimension_numbers = #tpu.dot_dimension_numbers<[1], [0], [0], [1], [0, 0, 1, 1], [], []>} : vector<16x32xbf16>, vector<32x512xbf16>, vector<16x512xf32> -> vector<16x512xf32>
      %c0_13 = arith.constant 0 : index
      %c0_14 = arith.constant 0 : index
      %13 = vector.load %arg4[%c0_13, %c0_14] : memref<1x512xf32, #tpu.memory_space<vmem>>, vector<1x512xf32>
      %14 = vector.broadcast %13 : vector<1x512xf32> to vector<16x512xf32>
      %15 = arith.addf %12, %14 : vector<16x512xf32>
      %cst_15 = arith.constant 0.000000e+00 : f32
      %16 = vector.broadcast %cst_15 : f32 to vector<16x512xf32>
      %17 = arith.maximumf %15, %16 : vector<16x512xf32>
      %18 = arith.truncf %17 : vector<16x512xf32> to vector<16x512xbf16>
      %c0_16 = arith.constant 0 : index
      %c0_17 = arith.constant 0 : index
      %19 = vector.load %arg8[%c0_16, %c0_17] : memref<16x512xbf16, #tpu.memory_space<vmem>>, vector<16x512xbf16>
      tpu.vector_store %arg8[%c0_16, %c0_17], %18 {strides = array<i32>} : memref<16x512xbf16, #tpu.memory_space<vmem>>, vector<16x512xbf16>,
    } else {
    }
    %c0 = arith.constant 0 : index
    %c0_1 = arith.constant 0 : index
    %3 = vector.load %arg8[%c0, %c0_1] : memref<16x512xbf16, #tpu.memory_space<vmem>>, vector<16x512xbf16>
    %c0_2 = arith.constant 0 : index
    %c0_3 = arith.constant 0 : index
    %4 = vector.load %arg5[%c0_2, %c0_3] : memref<512x128xbf16, #tpu.memory_space<vmem>>, vector<512x128xbf16>
    %cst = arith.constant dense<0.000000e+00> : vector<16x128xf32>
    %5 = tpu.matmul %3, %4, %cst {dimension_numbers = #tpu.dot_dimension_numbers<[1], [0], [0], [1], [0, 0, 1, 1], [], []>} : vector<16x512xbf16>, vector<512x128xbf16>, vector<16x128xf32> -> vector<16x128xf32>
    %c0_4 = arith.constant 0 : index
    %c0_5 = arith.constant 0 : index
    %6 = vector.load %arg6[%c0_4, %c0_5] : memref<1x128xf32, #tpu.memory_space<vmem>>, vector<1x128xf32>
    %7 = vector.broadcast %6 : vector<1x128xf32> to vector<16x128xf32>
    %8 = arith.addf %5, %7 : vector<16x128xf32>
    %c0_6 = arith.constant 0 : index
    %c0_7 = arith.constant 0 : index
    %9 = vector.load %arg7[%c0_6, %c0_7] : memref<16x128xf32, #tpu.memory_space<vmem>>, vector<16x128xf32>
    tpu.vector_store %arg7[%c0_6, %c0_7], %8 {strides = array<i32>} : memref<16x128xf32, #tpu.memory_space<vmem>>, vector<16x128xf32>,
    return
  }
  func.func @transform_0(%arg0: i32, %arg1: i32) -> (i32, i32) {
    %c0_i32 = arith.constant 0 : i32
    %c0_i32_0 = arith.constant 0 : i32
    return %arg0, %c0_i32 : i32, i32
  }
  func.func @transform_1(%arg0: i32, %arg1: i32) -> (i32, i32) {
    %c0_i32 = arith.constant 0 : i32
    %c0_i32_0 = arith.constant 0 : i32
    %c0_i32_1 = arith.constant 0 : i32
    return %c0_i32, %c0_i32_0 : i32, i32
  }
  func.func @transform_2(%arg0: i32, %arg1: i32) -> (i32, i32) {
    %c0_i32 = arith.constant 0 : i32
    %c0_i32_0 = arith.constant 0 : i32
    %c0_i32_1 = arith.constant 0 : i32
    return %c0_i32, %c0_i32_0 : i32, i32
  }
  func.func @transform_3(%arg0: i32, %arg1: i32) -> (i32, i32) {
    %c0_i32 = arith.constant 0 : i32
    %c0_i32_0 = arith.constant 0 : i32
    return %c0_i32, %arg1 : i32, i32
  }
  func.func @transform_4(%arg0: i32, %arg1: i32) -> (i32, i32) {
    %c0_i32 = arith.constant 0 : i32
    %c0_i32_0 = arith.constant 0 : i32
    return %c0_i32, %arg1 : i32, i32
  }
  func.func @transform_5(%arg0: i32, %arg1: i32) -> (i32, i32) {
    %c0_i32 = arith.constant 0 : i32
    return %arg0, %arg1 : i32, i32
  }
}

</mosaic_0001>

<bundles_post_ra>
// kernel: inverse_embedding_mlp.1
= control target key start
LH: loop header
LB: loop body
LE: loop exit
PB: predicated region body
PF: predicated region fallthrough
CT: control target
= control target key end

     0   :  { %10 = vsyncpa [#allocation5], 0  ;;  %s1882_s0 = inlined_call_operand.vmem [shape: bf16[16,32], index: 0, kind: input, shape index: {}]   ;;  %s1883_s1 = inlined_call_operand.vmem [shape: bf16[32,512], index: 1, kind: input, shape index: {}]   ;;  %s1884_s2 = inlined_call_operand.vmem [shape: f32[1,512], index: 2, kind: input, shape index: {}]   ;;  %s1885_s3 = inlined_call_operand.vmem [shape: bf16[512,384], index: 3, kind: input, shape index: {}]   ;;  %s1886_s4 = inlined_call_operand.vmem [shape: f32[1,384], index: 4, kind: input, shape index: {}]   ;;  %s1887_s5 = inlined_call_operand.hbm [shape: f32[16,384], index: 5, kind: output, shape index: {}]  }
   0x1   :  { %12 = vsyncpa [#allocation5 + $0x1], 0  ;;  %s1546_s18 = smov 0   ;;  %s1548_s19 = smov 0  }
   0x2   :  { %s1550_s20 = smov 0   ;;  %s1552_s21 = smov 0  }
   0x3   :  { %s1554_s22 = smov 0   ;;  %s1556_s23 = smov 0  }
   0x4 LB: > { %s1224_s24 = sadd.s32 4294967295, %s1509_s23   ;;  %s1225_s25 = sadd.s32 4294967294, %s1509_s23   ;;  %s1509_s23 = sphi %s1556_s23, %s18_s23   ;;  %s1505_s22 = sphi %s1554_s22, %s1894_s22   ;;  %s1501_s21 = sphi %s1552_s21, %s1893_s21   ;;  %s1497_s20 = sphi %s1550_s20, %s1892_s20   ;;  %s1493_s19 = sphi %s1548_s19, %s1891_s19   ;;  %s1489_s18 = sphi %s1546_s18, %s1890_s18  }
   0x5   : > { %s27_s26 = sadd.s32 1, %s1505_s22  ;;  %s105_s27 = sadd.s32 1, %s1497_s20 }
   0x6   : > { %p28_p0 = scmp.ge.s32.totalorder %s27_s26, 3  ;;  %p112_p1 = scmp.ne.s32.totalorder %s1497_s20, %s1493_s19 }
   0x7   : > { %p113_p2 = scmp.eq.s32.totalorder %s1509_s23, 0  ;;  %p170_p3 = scmp.eq.s32.totalorder %s1224_s24, 2 }
   0x8   : > { %s1896_s26 = smov (%p28_p0, %s27_s26), 0  ;;  %p175_p6 = scmp.ne.s32.totalorder %s1493_s19, %s1489_s18 }
   0x9   : > { %p114_p4 = por %p113_p2, %p112_p1  ;;  %p1585_p5 = por %p170_p3, %p112_p1 }
   0xa   : > { %s102_s29 = ssub.s32 %s1505_s22, %s1896_s26  ;;  %p176_p8 = scmp.eq.s32.totalorder %s1225_s25, 2 }
   0xb   : > { %p103_p7 = scmp.eq.s32.totalorder %s102_s29, 0  ;;  %p1228_p10 = scmp.ge.s32.totalorder %s1509_s23, 3 }
   0xc   : > { %p1596_p9 = por %p176_p8, %p175_p6 }
   0xd   : > { %s1594_s30 = scalar_select %p103_p7, %s1497_s20, %s105_s27  }
   0xe   : > { %207 = sbr.rel (%p1228_p10) target bundleno = 67 (0x43), region = 28 }
  0x15   : > { %210 = sbr.rel (!%p114_p4) target bundleno = 67 (0x43), region = 32  ;;  %s212_s7 = sand.u32 (%p114_p4), 1, %s1497_s20  }
  0x16   : > { %s1230_s8 = sshll.u32 (%p114_p4), %s1505_s22, 2  ;;  %s1229_s9 = sshll.u32 (%p114_p4), %s212_s7, 8 }
  0x17   : > { %s1606_s12 = scalar_lea.vmem (%p114_p4), %s1885_s3, %s1230_s8  ;;  %s1610_s13 = scalar_lea.vmem (%p114_p4), [#allocation3], %s1229_s9 }
  0x18   : > { %v232_v0 = vld [vmem:[%s1606_s12] sm:$0xf] (%p114_p4)  ;;  %v234_v1 = vld [vmem:[%s1606_s12 + $0xc] sm:$0xf] (%p114_p4)  ;;  %v236_v2 = vld [vmem:[%s1606_s12 + $0x18] sm:$0xf] (%p114_p4) }
  0x19   : > { %233 = vst [vmem:[%s1610_s13] sm:$0xf] (%p114_p4), %v232_v0  ;;  %235 = vst [vmem:[%s1610_s13 + $0x4] sm:$0xf] (%p114_p4), %v234_v1  ;;  %v238_v3 = vld [vmem:[%s1606_s12 + $0x24] sm:$0xf] (%p114_p4) }
  0x1a   : > { %v240_v4 = vld [vmem:[%s1606_s12 + $0x30] sm:$0xf] (%p114_p4)  ;;  %237 = vst [vmem:[%s1610_s13 + $0x8] sm:$0xf] (%p114_p4), %v236_v2  ;;  %239 = vst [vmem:[%s1610_s13 + $0xc] sm:$0xf] (%p114_p4), %v238_v3 }
  0x1b   : > { %241 = vst [vmem:[%s1610_s13 + $0x10] sm:$0xf] (%p114_p4), %v240_v4  ;;  %v242_v5 = vld [vmem:[%s1606_s12 + $0x3c] sm:$0xf] (%p114_p4)  ;;  %v244_v6 = vld [vmem:[%s1606_s12 + $0x48] sm:$0xf] (%p114_p4) }
  0x1c   : > { %v246_v7 = vld [vmem:[%s1606_s12 + $0x54] sm:$0xf]  ;;  %243 = vst [vmem:[%s1610_s13 + $0x14] sm:$0xf] %v242_v5  ;;  %245 = vst [vmem:[%s1610_s13 + $0x18] sm:$0xf] %v244_v6 }
  0x1d   : > { %247 = vst [vmem:[%s1610_s13 + $0x1c] sm:$0xf] %v246_v7  ;;  %v248_v8 = vld [vmem:[%s1606_s12 + $0x60] sm:$0xf]  ;;  %v250_v9 = vld [vmem:[%s1606_s12 + $0x6c] sm:$0xf] }
  0x1e   : > { %v252_v10 = vld [vmem:[%s1606_s12 + $0x78] sm:$0xf]  ;;  %249 = vst [vmem:[%s1610_s13 + $0x20] sm:$0xf] %v248_v8  ;;  %251 = vst [vmem:[%s1610_s13 + $0x24] sm:$0xf] %v250_v9 }
  0x1f   : > { %253 = vst [vmem:[%s1610_s13 + $0x28] sm:$0xf] %v252_v10  ;;  %v254_v11 = vld [vmem:[%s1606_s12 + $0x84] sm:$0xf]  ;;  %v256_v12 = vld [vmem:[%s1606_s12 + $0x90] sm:$0xf] }
  0x20   : > { %v258_v13 = vld [vmem:[%s1606_s12 + $0x9c] sm:$0xf]  ;;  %255 = vst [vmem:[%s1610_s13 + $0x2c] sm:$0xf] %v254_v11  ;;  %257 = vst [vmem:[%s1610_s13 + $0x30] sm:$0xf] %v256_v12 }
  0x21   : > { %259 = vst [vmem:[%s1610_s13 + $0x34] sm:$0xf] %v258_v13  ;;  %v260_v14 = vld [vmem:[%s1606_s12 + $0xa8] sm:$0xf]  ;;  %v262_v15 = vld [vmem:[%s1606_s12 + $0xb4] sm:$0xf] }
  0x22   : > { %v264_v16 = vld [vmem:[%s1606_s12 + $0xc0] sm:$0xf]  ;;  %261 = vst [vmem:[%s1610_s13 + $0x38] sm:$0xf] %v260_v14  ;;  %263 = vst [vmem:[%s1610_s13 + $0x3c] sm:$0xf] %v262_v15 }
  0x23   : > { %265 = vst [vmem:[%s1610_s13 + $0x40] sm:$0xf] %v264_v16  ;;  %v266_v17 = vld [vmem:[%s1606_s12 + $0xcc] sm:$0xf]  ;;  %v268_v18 = vld [vmem:[%s1606_s12 + $0xd8] sm:$0xf] }
  0x24   : > { %v270_v19 = vld [vmem:[%s1606_s12 + $0xe4] sm:$0xf]  ;;  %267 = vst [vmem:[%s1610_s13 + $0x44] sm:$0xf] %v266_v17  ;;  %269 = vst [vmem:[%s1610_s13 + $0x48] sm:$0xf] %v268_v18 }
  0x25   : > { %271 = vst [vmem:[%s1610_s13 + $0x4c] sm:$0xf] %v270_v19  ;;  %v272_v20 = vld [vmem:[%s1606_s12 + $0xf0] sm:$0xf]  ;;  %v274_v21 = vld [vmem:[%s1606_s12 + $0xfc] sm:$0xf] }
  0x26   : > { %v276_v22 = vld [vmem:[%s1606_s12 + $0x108] sm:$0xf]  ;;  %273 = vst [vmem:[%s1610_s13 + $0x50] sm:$0xf] %v272_v20  ;;  %275 = vst [vmem:[%s1610_s13 + $0x54] sm:$0xf] %v274_v21 }
  0x27   : > { %277 = vst [vmem:[%s1610_s13 + $0x58] sm:$0xf] %v276_v22  ;;  %v278_v23 = vld [vmem:[%s1606_s12 + $0x114] sm:$0xf]  ;;  %v280_v24 = vld [vmem:[%s1606_s12 + $0x120] sm:$0xf] }
  0x28   : > { %v282_v25 = vld [vmem:[%s1606_s12 + $0x12c] sm:$0xf]  ;;  %279 = vst [vmem:[%s1610_s13 + $0x5c] sm:$0xf] %v278_v23  ;;  %281 = vst [vmem:[%s1610_s13 + $0x60] sm:$0xf] %v280_v24 }
  0x29   : > { %283 = vst [vmem:[%s1610_s13 + $0x64] sm:$0xf] %v282_v25  ;;  %v284_v26 = vld [vmem:[%s1606_s12 + $0x138] sm:$0xf]  ;;  %v286_v27 = vld [vmem:[%s1606_s12 + $0x144] sm:$0xf] }
  0x2a   : > { %v288_v28 = vld [vmem:[%s1606_s12 + $0x150] sm:$0xf]  ;;  %285 = vst [vmem:[%s1610_s13 + $0x68] sm:$0xf] %v284_v26  ;;  %287 = vst [vmem:[%s1610_s13 + $0x6c] sm:$0xf] %v286_v27 }
  0x2b   : > { %289 = vst [vmem:[%s1610_s13 + $0x70] sm:$0xf] %v288_v28  ;;  %v290_v29 = vld [vmem:[%s1606_s12 + $0x15c] sm:$0xf]  ;;  %v292_v30 = vld [vmem:[%s1606_s12 + $0x168] sm:$0xf] }
  0x2c   : > { %v294_v31 = vld [vmem:[%s1606_s12 + $0x174] sm:$0xf]  ;;  %291 = vst [vmem:[%s1610_s13 + $0x74] sm:$0xf] %v290_v29  ;;  %293 = vst [vmem:[%s1610_s13 + $0x78] sm:$0xf] %v292_v30 }
  0x2d   : > { %295 = vst [vmem:[%s1610_s13 + $0x7c] sm:$0xf] %v294_v31  ;;  %v296_v32 = vld [vmem:[%s1606_s12 + $0x180] sm:$0xf]  ;;  %v298_v33 = vld [vmem:[%s1606_s12 + $0x18c] sm:$0xf] }
  0x2e   : > { %v300_v34 = vld [vmem:[%s1606_s12 + $0x198] sm:$0xf]  ;;  %297 = vst [vmem:[%s1610_s13 + $0x80] sm:$0xf] %v296_v32  ;;  %299 = vst [vmem:[%s1610_s13 + $0x84] sm:$0xf] %v298_v33 }
  0x2f   : > { %301 = vst [vmem:[%s1610_s13 + $0x88] sm:$0xf] %v300_v34  ;;  %v302_v35 = vld [vmem:[%s1606_s12 + $0x1a4] sm:$0xf]  ;;  %v304_v36 = vld [vmem:[%s1606_s12 + $0x1b0] sm:$0xf] }
  0x30   : > { %v306_v37 = vld [vmem:[%s1606_s12 + $0x1bc] sm:$0xf]  ;;  %303 = vst [vmem:[%s1610_s13 + $0x8c] sm:$0xf] %v302_v35  ;;  %305 = vst [vmem:[%s1610_s13 + $0x90] sm:$0xf] %v304_v36 }
  0x31   : > { %307 = vst [vmem:[%s1610_s13 + $0x94] sm:$0xf] %v306_v37  ;;  %v308_v38 = vld [vmem:[%s1606_s12 + $0x1c8] sm:$0xf]  ;;  %v310_v39 = vld [vmem:[%s1606_s12 + $0x1d4] sm:$0xf] }
  0x32   : > { %v312_v40 = vld [vmem:[%s1606_s12 + $0x1e0] sm:$0xf]  ;;  %309 = vst [vmem:[%s1610_s13 + $0x98] sm:$0xf] %v308_v38  ;;  %311 = vst [vmem:[%s1610_s13 + $0x9c] sm:$0xf] %v310_v39 }
  0x33   : > { %313 = vst [vmem:[%s1610_s13 + $0xa0] sm:$0xf] %v312_v40  ;;  %v314_v41 = vld [vmem:[%s1606_s12 + $0x1ec] sm:$0xf]  ;;  %v316_v42 = vld [vmem:[%s1606_s12 + $0x1f8] sm:$0xf] }
  0x34   : > { %v318_v43 = vld [vmem:[%s1606_s12 + $0x204] sm:$0xf]  ;;  %315 = vst [vmem:[%s1610_s13 + $0xa4] sm:$0xf] %v314_v41  ;;  %317 = vst [vmem:[%s1610_s13 + $0xa8] sm:$0xf] %v316_v42 }
  0x35   : > { %319 = vst [vmem:[%s1610_s13 + $0xac] sm:$0xf] %v318_v43  ;;  %v320_v44 = vld [vmem:[%s1606_s12 + $0x210] sm:$0xf]  ;;  %v322_v45 = vld [vmem:[%s1606_s12 + $0x21c] sm:$0xf] }
  0x36   : > { %v324_v46 = vld [vmem:[%s1606_s12 + $0x228] sm:$0xf]  ;;  %321 = vst [vmem:[%s1610_s13 + $0xb0] sm:$0xf] %v320_v44  ;;  %323 = vst [vmem:[%s1610_s13 + $0xb4] sm:$0xf] %v322_v45 }
  0x37   : > { %325 = vst [vmem:[%s1610_s13 + $0xb8] sm:$0xf] %v324_v46  ;;  %v326_v47 = vld [vmem:[%s1606_s12 + $0x234] sm:$0xf]  ;;  %v328_v48 = vld [vmem:[%s1606_s12 + $0x240] sm:$0xf] }
  0x38   : > { %v330_v49 = vld [vmem:[%s1606_s12 + $0x24c] sm:$0xf]  ;;  %327 = vst [vmem:[%s1610_s13 + $0xbc] sm:$0xf] %v326_v47  ;;  %329 = vst [vmem:[%s1610_s13 + $0xc0] sm:$0xf] %v328_v48 }
  0x39   : > { %331 = vst [vmem:[%s1610_s13 + $0xc4] sm:$0xf] %v330_v49  ;;  %v332_v50 = vld [vmem:[%s1606_s12 + $0x258] sm:$0xf]  ;;  %v334_v51 = vld [vmem:[%s1606_s12 + $0x264] sm:$0xf] }
  0x3a   : > { %v336_v52 = vld [vmem:[%s1606_s12 + $0x270] sm:$0xf]  ;;  %333 = vst [vmem:[%s1610_s13 + $0xc8] sm:$0xf] %v332_v50  ;;  %335 = vst [vmem:[%s1610_s13 + $0xcc] sm:$0xf] %v334_v51 }
  0x3b   : > { %337 = vst [vmem:[%s1610_s13 + $0xd0] sm:$0xf] %v336_v52  ;;  %v338_v53 = vld [vmem:[%s1606_s12 + $0x27c] sm:$0xf]  ;;  %v340_v54 = vld [vmem:[%s1606_s12 + $0x288] sm:$0xf] }
  0x3c   : > { %v342_v55 = vld [vmem:[%s1606_s12 + $0x294] sm:$0xf]  ;;  %339 = vst [vmem:[%s1610_s13 + $0xd4] sm:$0xf] %v338_v53  ;;  %341 = vst [vmem:[%s1610_s13 + $0xd8] sm:$0xf] %v340_v54 }
  0x3d   : > { %343 = vst [vmem:[%s1610_s13 + $0xdc] sm:$0xf] %v342_v55  ;;  %v344_v56 = vld [vmem:[%s1606_s12 + $0x2a0] sm:$0xf]  ;;  %v346_v57 = vld [vmem:[%s1606_s12 + $0x2ac] sm:$0xf] }
  0x3e   : > { %v348_v58 = vld [vmem:[%s1606_s12 + $0x2b8] sm:$0xf]  ;;  %345 = vst [vmem:[%s1610_s13 + $0xe0] sm:$0xf] %v344_v56  ;;  %347 = vst [vmem:[%s1610_s13 + $0xe4] sm:$0xf] %v346_v57 }
  0x3f   : > { %349 = vst [vmem:[%s1610_s13 + $0xe8] sm:$0xf] %v348_v58  ;;  %v350_v59 = vld [vmem:[%s1606_s12 + $0x2c4] sm:$0xf]  ;;  %v352_v60 = vld [vmem:[%s1606_s12 + $0x2d0] sm:$0xf] }
  0x40   : > { %v354_v61 = vld [vmem:[%s1606_s12 + $0x2dc] sm:$0xf]  ;;  %351 = vst [vmem:[%s1610_s13 + $0xec] sm:$0xf] %v350_v59  ;;  %353 = vst [vmem:[%s1610_s13 + $0xf0] sm:$0xf] %v352_v60 }
  0x41   : > { %355 = vst [vmem:[%s1610_s13 + $0xf4] sm:$0xf] %v354_v61  ;;  %v356_v62 = vld [vmem:[%s1606_s12 + $0x2e8] sm:$0xf]  ;;  %v358_v63 = vld [vmem:[%s1606_s12 + $0x2f4] sm:$0xf] }
  0x42   : > { %357 = vst [vmem:[%s1610_s13 + $0xf8] sm:$0xf] %v356_v62  ;;  %359 = vst [vmem:[%s1610_s13 + $0xfc] sm:$0xf] %v358_v63 }
  0x43 PF: > { %p1231_p11 = scmp.ge.s32.totalorder %s1509_s23, 1  ;;  %p515_p12 = scmp.lt.s32.totalorder %s1509_s23, 4 }
  0x45   : > { %p516_p13 = pnand %p1231_p11, %p515_p12 }
  0x46   : > { %s1741_s14 = sand.u32 (!%p516_p13), 1, %s1493_s19   ;;  %p563_p0 = scmp.lt.s32.totalorder (!%p516_p13), %s1501_s21, 2 }
  0x47   : > { %519 = sbr.rel (%p516_p13) target bundleno = 582 (0x246), region = 77  ;;  %s1232_s15 = sshll.u32 (!%p516_p13), %s1741_s14, 8 }
  0x48   : > { %s1233_s16 = sshll.u32 (!%p516_p13), %s1741_s14, 4  ;;  %s1753_s29 = scalar_lea.vmem (!%p516_p13), [#allocation3], %s1232_s15 }
  0x49   : > { %s1755_s7 = scalar_lea.vmem (!%p516_p13), [#allocation4], %s1233_s16  ;;  %p1234_p1 = scmp.ne.s32.totalorder (!%p516_p13), %s1501_s21, 0 }
  0x4e   : > { %s1747_s17 = scalar_select %p563_p0, %s1501_s21, 2 }
  0x4f   : > { %571 = sbr.rel (%p1234_p1) target bundleno = 311 (0x137), region = 85  ;;  %v1386_v0 = vld [vmem:[%s1883_s1 + $0x4] ss:$16 sps:$4 sm:$0xff] (!%p1234_p1)   ;;  %v1388_v1 = vld [vmem:[%s1883_s1 + $0xc] ss:$16 sps:$4 sm:$0xff] (!%p1234_p1)   ;;  %v1511_v2 = vmov (!%p1234_p1), 0   ;;  %v584_v10 = vlaneseq (!%p1234_p1) }
  0x50   : > { %s565_s27 = scalar_lea.vmem %s1886_s4, %s1747_s17  ;;  %685 = vmatprep.mubr.bf16.mxu0 (!%p1234_p1), %v1511_v2  ;;  %728 = vmatprep.mubr.bf16.mxu1 (!%p1234_p1), %v1511_v2  ;;  %v1390_v3 = vld [vmem:[%s1883_s1] ss:$16 sps:$4 sm:$0xff] (!%p1234_p1)   ;;  %v1391_v4 = vld [vmem:[%s1883_s1 + $0x8] ss:$16 sps:$4 sm:$0xff] (!%p1234_p1)   ;;  %v1392_v5 = vld [vmem:[%s1883_s1 + $0x24] ss:$16 sps:$4 sm:$0xff] (!%p1234_p1)  }
  0x51   : > { %653 = vmatprep.subr.bf16.mxu0 (!%p1234_p1), %v1386_v0  ;;  %696 = vmatprep.subr.bf16.mxu1 (!%p1234_p1), %v1388_v1  ;;  %v1394_v6 = vld [vmem:[%s1883_s1 + $0x2c] ss:$16 sps:$4 sm:$0xff] (!%p1234_p1)   ;;  %v1396_v7 = vld [vmem:[%s1883_s1 + $0x20] ss:$16 sps:$4 sm:$0xff] (!%p1234_p1)   ;;  %v1397_v8 = vld [vmem:[%s1883_s1 + $0x28] ss:$16 sps:$4 sm:$0xff] (!%p1234_p1)  }
  0x52   : > { %654 = vmatpush1.bf16.msra.mxu0 (!%p1234_p1), %v1390_v3  ;;  %697 = vmatpush1.bf16.msra.mxu1 (!%p1234_p1), %v1391_v4  ;;  %v1398_v9 = vld [vmem:[%s1882_s0] sm:$0xff] (!%p1234_p1)   ;;  %vm649_vm0 = vcmask (!%p1234_p1), 261120   ;;  %v585_v11 = vshrl.u32 (!%p1234_p1), %v584_v10, 7 }
  0x53   : > { %655 = vmatprep.subr.bf16.mxu0 (!%p1234_p1), %v1392_v5  ;;  %698 = vmatprep.subr.bf16.mxu1 (!%p1234_p1), %v1394_v6  ;;  %v582_v14 = vld [vmem:[%s1884_s2] sm:$0xf] (!%p1234_p1) }
  0x54   : > { %v586_v12 = vsub.s32 (!%p1234_p1), 0, %v585_v11  ;;  %v594_v13 = vsub.s32 (!%p1234_p1), 2, %v585_v11  ;;  %v590_v15 = vsub.s32 (!%p1234_p1), 1, %v585_v11  ;;  %v598_v16 = vsub.s32 (!%p1234_p1), 3, %v585_v11 }
  0x56   : > { %656 = vmatpush1.bf16.msra.mxu0 %v1396_v7  ;;  %699 = vmatpush1.bf16.msra.mxu1 %v1397_v8  ;;  %v587_v17 = vrot.slane %v582_v14, %v586_v12  ;;  %v595_v18 = vrot.slane %v582_v14, %v594_v13  ;;  %v591_v19 = vrot.slane %v582_v14, %v590_v15 }
  0x57   : > { %v599_v20 = vrot.slane %v582_v14, %v598_v16 }
  0x59   : > { %1244 = vmatmul.mubr.msk.bf16.vlgmr.msra.gmra.mrb[0].mxu0 %vm649_vm0, %v1398_v9  ;;  %1245 = vmatmul.mubr.msk.bf16.vlgmr.msra.gmra.mrb[0].mxu1 %vm649_vm0, %v1398_v9 }
 0x12c   : > { %v687_v21 = vpop.f32.mrb[0].mxu0  ;;  %v730_v22 = vpop.f32.mrb[0].mxu1 }
 0x12d   : > { %v688_v23 = vadd.f32 %v687_v21, %v587_v17  ;;  %v731_v24 = vadd.f32 %v730_v22, %v595_v18  ;;  %v689_v25 = vpop.f32.mrb[1].mxu0  ;;  %v732_v26 = vpop.f32.mrb[1].mxu1 }
 0x12e   : > { %v690_v27 = vadd.f32 %v689_v25, %v591_v19  ;;  %v733_v28 = vadd.f32 %v732_v26, %v599_v20  ;;  %v691_v29 = vpop.f32.mrb[2].mxu0  ;;  %v734_v30 = vpop.f32.mrb[2].mxu1 }
 0x12f   : > { %v692_v31 = vadd.f32 %v691_v29, %v587_v17  ;;  %v735_v32 = vadd.f32 %v734_v30, %v595_v18  ;;  %v693_v33 = vpop.f32.mrb[3].mxu0  ;;  %v736_v34 = vpop.f32.mrb[3].mxu1  ;;  %v739_v37 = vmax.f32 %v688_v23, 0.0  ;;  %v741_v38 = vmax.f32 %v731_v24, 0.0 }
 0x130   : > { %v694_v35 = vadd.f32 %v693_v33, %v591_v19  ;;  %v737_v36 = vadd.f32 %v736_v34, %v599_v20  ;;  %v740_v41 = vmax.f32 %v690_v27, 0.0  ;;  %v742_v42 = vmax.f32 %v733_v28, 0.0 }
 0x131   : > { %v743_v39 = vmax.f32 %v692_v31, 0.0  ;;  %v745_v40 = vmax.f32 %v735_v32, 0.0 }
 0x132   : > { %v744_v43 = vmax.f32 %v694_v35, 0.0  ;;  %v746_v44 = vmax.f32 %v737_v36, 0.0 }
 0x133   : > { %v747_v45 = vpack.c.bf16 %v743_v39, %v739_v37  ;;  %v749_v46 = vpack.c.bf16 %v745_v40, %v741_v38 }
 0x134   : > { %v748_v47 = vpack.c.bf16 %v744_v43, %v740_v41  ;;  %v750_v48 = vpack.c.bf16 %v746_v44, %v742_v42 }
 0x135   : > { %751 = vst [vmem:[#allocation2] sm:$0xff] %v747_v45  ;;  %753 = vst [vmem:[#allocation2 + $0x10] sm:$0xff] %v749_v46 }
 0x136   : > { %752 = vst [vmem:[#allocation2 + $0x8] sm:$0xff] %v748_v47  ;;  %754 = vst [vmem:[#allocation2 + $0x18] sm:$0xff] %v750_v48 }
 0x137 PF: > { %v1399_v49 = vld [vmem:[%s1753_s29 + $0x40] sm:$0xff]   ;;  %v1403_v53 = vld [vmem:[%s1753_s29 + $0x48] sm:$0xff]   ;;  %v1407_v57 = vld [vmem:[%s1753_s29 + $0x50] sm:$0xff]   ;;  %s1122_s10 = sshll.u32 %s1755_s7, 4  ;;  %s1512_s13 = smov [#allocation4]   ;;  %s1832_s10 = int_to_ptr.vmem [resolvable:$true] %s1122_s10 }
 0x138   : > { %v1400_v50 = vld [vmem:[%s1753_s29 + $0xc0] sm:$0xff]   ;;  %1283 = vmatprep.subr.bf16.mxu0 %v1399_v49  ;;  %v1404_v54 = vld [vmem:[%s1753_s29 + $0xc8] sm:$0xff]   ;;  %v1408_v58 = vld [vmem:[%s1753_s29 + $0xd0] sm:$0xff]   ;;  %s1431_s12 = scalar_lea.vmem %s1832_s10, 256  ;;  %s1435_s15 = sshll.u32 %s1512_s13, 4  ;;  %s1436_s15 = int_to_ptr.vmem [resolvable:$false] %s1435_s15 }
 0x139   : > { %v1401_v51 = vld [vmem:[%s1753_s29] sm:$0xff]   ;;  %1305 = vmatprep.subr.bf16.mxu1 %v1400_v50  ;;  %v1405_v55 = vld [vmem:[%s1753_s29 + $0x8] sm:$0xff]   ;;  %v1409_v59 = vld [vmem:[%s1753_s29 + $0x10] sm:$0xff]   ;;  %p1432_p2 = scmp.ne.s32.totalorder %s1832_s10, %s1431_s12  ;;  %s1437_s16 = scalar_lea.vmem %s1436_s15, 512 }
 0x13a   : > { %v1402_v52 = vld [vmem:[%s1753_s29 + $0x80] sm:$0xff]   ;;  %1284 = vmatpush3.bf16.msra.mxu0 %v1401_v51  ;;  %v1406_v56 = vld [vmem:[%s1753_s29 + $0x88] sm:$0xff]   ;;  %v1410_v60 = vld [vmem:[%s1753_s29 + $0x90] sm:$0xff]   ;;  %p1438_p6 = scmp.lt.s32.totalorder %s1832_s10, %s1436_s15  ;;  %p1439_p7 = scmp.lt.s32.totalorder %s1437_s16, %s1431_s12 }
 0x13b   : > { %1306 = vmatpush3.bf16.msra.mxu1 %v1402_v52  ;;  %1285 = vmatprep.subr.bf16.mxu0 %v1403_v53  ;;  %v1411_v61 = vld [vmem:[%s1753_s29 + $0x58] sm:$0xff]   ;;  %v1415_v1 = vld [vmem:[%s1753_s29 + $0x60] sm:$0xff]   ;;  %v1419_v5 = vld [vmem:[%s1753_s29 + $0x68] sm:$0xff]   ;;  %p1433_p3 = pnand %p1432_p2, %p1585_p5 }
 0x13c   : > { %1307 = vmatprep.subr.bf16.mxu1 %v1404_v54  ;;  %v1412_v62 = vld [vmem:[%s1753_s29 + $0xd8] sm:$0xff]   ;;  %v1416_v2 = vld [vmem:[%s1753_s29 + $0xe0] sm:$0xff]   ;;  %v1420_v6 = vld [vmem:[%s1753_s29 + $0xe8] sm:$0xff]   ;;  %p1440_p8 = por %p1439_p7, %p1438_p6 }
 0x13d   : > { %v1413_v63 = vld [vmem:[%s1753_s29 + $0x18] sm:$0xff]   ;;  %v1417_v3 = vld [vmem:[%s1753_s29 + $0x20] sm:$0xff]   ;;  %v1421_v7 = vld [vmem:[%s1753_s29 + $0x28] sm:$0xff]   ;;  %p1434_p4 = pneg %p1433_p3 }
 0x13e   : > { %1286 = vmatpush3.bf16.msra.mxu0 %v1405_v55  ;;  %v1414_v0 = vld [vmem:[%s1753_s29 + $0x98] sm:$0xff]   ;;  %v1418_v4 = vld [vmem:[%s1753_s29 + $0xa0] sm:$0xff]   ;;  %v1422_v8 = vld [vmem:[%s1753_s29 + $0xa8] sm:$0xff]  }
 0x13f   : > { %1308 = vmatpush3.bf16.msra.mxu1 %v1406_v56  ;;  %1287 = vmatprep.subr.bf16.mxu0 %v1407_v57  ;;  %v1423_v9 = vld [vmem:[%s1753_s29 + $0x70] sm:$0xff]   ;;  %v1427_v13 = vld [vmem:[%s1753_s29 + $0x78] sm:$0xff]   ;;  %v756_v17 = vld [vmem:[#allocation2 + $0x8] sm:$0xff]  ;;  %p1441_p10 = pnand %p1440_p8, %p1434_p4 }
 0x140   : > { %1309 = vmatprep.subr.bf16.mxu1 %v1408_v58  ;;  %v1424_v10 = vld [vmem:[%s1753_s29 + $0xf0] sm:$0xff]   ;;  %v1428_v14 = vld [vmem:[%s1753_s29 + $0xf8] sm:$0xff]   ;;  %v755_v19 = vld [vmem:[#allocation2] sm:$0xff]  ;;  %1054 = vmatprep.mubr.bf16.mxu0 %v756_v17 }
 0x141   : > { %v1425_v11 = vld [vmem:[%s1753_s29 + $0x30] sm:$0xff]   ;;  %v1429_v15 = vld [vmem:[%s1753_s29 + $0x38] sm:$0xff]   ;;  %v1246_v23 = vld [vmem:[%s565_s27] ss:$0 sm:$0xff] }
 0x142   : > { %1288 = vmatpush3.bf16.msra.mxu0 %v1409_v59  ;;  %v1426_v12 = vld [vmem:[%s1753_s29 + $0xb0] sm:$0xff]   ;;  %v1430_v16 = vld [vmem:[%s1753_s29 + $0xb8] sm:$0xff]   ;;  %s1280_s29 = sshll.u32 %s1501_s21, 7  ;;  %s1107_s21 = scalar_lea.sflag [#allocation5], %s1741_s14 }
 0x143   : > { %1310 = vmatpush3.bf16.msra.mxu1 %v1410_v60  ;;  %1289 = vmatprep.subr.bf16.mxu0 %v1411_v61  ;;  %v758_v18 = vld [vmem:[#allocation2 + $0x18] sm:$0xff]  ;;  %v757_v20 = vld [vmem:[#allocation2 + $0x10] sm:$0xff]  ;;  %s1830_s11 = scalar_lea.hbm %s1887_s5, %s1280_s29 }
 0x144   : > { %1311 = vmatprep.subr.bf16.mxu1 %v1412_v62  ;;  %1095 = vmatprep.mubr.bf16.mxu1 %v758_v18 }
 0x146   : > { %1290 = vmatpush3.bf16.msra.mxu0 %v1413_v63 }
 0x147   : > { %1312 = vmatpush3.bf16.msra.mxu1 %v1414_v0  ;;  %1291 = vmatprep.subr.bf16.mxu0 %v1415_v1 }
 0x148   : > { %1313 = vmatprep.subr.bf16.mxu1 %v1416_v2 }
 0x14a   : > { %1292 = vmatpush3.bf16.msra.mxu0 %v1417_v3 }
 0x14b   : > { %1314 = vmatpush3.bf16.msra.mxu1 %v1418_v4  ;;  %1293 = vmatprep.subr.bf16.mxu0 %v1419_v5 }
 0x14c   : > { %1315 = vmatprep.subr.bf16.mxu1 %v1420_v6 }
 0x14e   : > { %1294 = vmatpush3.bf16.msra.mxu0 %v1421_v7 }
 0x14f   : > { %1316 = vmatpush3.bf16.msra.mxu1 %v1422_v8  ;;  %1295 = vmatprep.subr.bf16.mxu0 %v1423_v9 }
 0x150   : > { %1317 = vmatprep.subr.bf16.mxu1 %v1424_v10 }
 0x152   : > { %1296 = vmatpush3.bf16.msra.mxu0 %v1425_v11 }
 0x153   : > { %1318 = vmatpush3.bf16.msra.mxu1 %v1426_v12  ;;  %1297 = vmatprep.subr.bf16.mxu0 %v1427_v13 }
 0x154   : > { %1319 = vmatprep.subr.bf16.mxu1 %v1428_v14 }
 0x156   : > { %1298 = vmatpush3.bf16.msra.mxu0 %v1429_v15 }
 0x157   : > { %1320 = vmatpush3.bf16.msra.mxu1 %v1430_v16 }
 0x159   : > { %1055 = vmatmul.mubr.bf16.vlgmr.msra.gmra.mrb[0].mxu0 %v755_v19 }
 0x15a   : > { %1096 = vmatmul.mubr.bf16.vlgmr.msra.gmra.mrb[0].mxu1 %v757_v20 }
 0x22c   : > { %v1299_v21 = vpop.f32.mrb[0].mxu0 }
 0x22d   : > { %v1321_v22 = vpop.f32.mrb[0].mxu1  ;;  %v1300_v24 = vpop.f32.mrb[1].mxu0 }
 0x22e   : > { %v1301_v25 = vadd.f32 %v1300_v24, %v1299_v21  ;;  %v1322_v26 = vpop.f32.mrb[1].mxu1  ;;  %v1302_v27 = vpop.f32.mrb[2].mxu0 }
 0x22f   : > { %v1323_v28 = vadd.f32 %v1322_v26, %v1321_v22  ;;  %v1324_v29 = vpop.f32.mrb[2].mxu1  ;;  %v1303_v30 = vpop.f32.mrb[3].mxu0 }
 0x230   : > { %v1057_v31 = vadd.f32 %v1301_v25, %v1246_v23  ;;  %v1304_v32 = vadd.f32 %v1303_v30, %v1302_v27  ;;  %v1325_v33 = vpop.f32.mrb[3].mxu1 }
 0x231   : > { %v1326_v34 = vadd.f32 %v1325_v33, %v1324_v29 }
 0x232   : > { %v1098_v35 = vadd.f32 %v1323_v28, %v1057_v31  ;;  %v1060_v36 = vadd.f32 %v1304_v32, %v1246_v23 }
 0x234   : > { %1104 = vst [vmem:[%s1755_s7] sm:$0xff] %v1098_v35  ;;  %v1101_v37 = vadd.f32 %v1326_v34, %v1060_v36 }
 0x236   : > { %1105 = vst [vmem:[%s1755_s7 + $0x8] sm:$0xff] %v1101_v37 }
 0x237   : > { %1444 = shalt.err (!%p1441_p10)
}
 0x238   : > { %s1445_s7 = scalar_lea.hbm %s1830_s11, 256  ;;  %s1449_s8 = scalar_lea.hbm %s1887_s5, 768 }
 0x239   : > { %p1446_p11 = scmp.ne.s32.totalorder %s1830_s11, %s1445_s7  ;;  %p1450_p0 = scmp.lt.u32.totalorder %s1830_s11, %s1887_s5 }
 0x23a   : > { %p1451_p1 = scmp.lt.u32.totalorder %s1449_s8, %s1445_s7  ;;  %p1453_p3 = scmp.lt.u32.totalorder %s1445_s7, %s1830_s11 }
 0x23b   : > { %p1447_p12 = pnand %p1446_p11, %p1585_p5 }
 0x23c   : > { %p1452_p2 = por %p1451_p1, %p1450_p0 }
 0x23d   : > { %p1448_p13 = pneg %p1447_p12 }
 0x23e   : > { %p1454_p4 = por %p1453_p3, %p1452_p2 }
 0x240   : > { %p1455_p6 = pnand %p1454_p4, %p1448_p13 }
 0x242   : > { %1458 = shalt.err (!%p1455_p6)
}
 0x243   : > { %s1513_s17 = smov 128   ;;  %s1514_s27 = smov 384  }
 0x244   : > { %s1515_s12 = smov 8  }
 0x245   : > { %1327 = dma.vmem_to_hbm [thread:$0]  (%p1585_p5), %s1832_s10, 256, %s1830_s11, %s1107_s21, %s1513_s17, %s1514_s27, %s1515_s12  }
 0x246 PF: > { %p1333_p7 = scmp.ge.s32.totalorder %s1509_s23, 2  ;;  %s1137_s13 = sand.u32 1, %s1489_s18  }
 0x247   : > { %s1138_s15 = scalar_lea.sflag [#allocation5], %s1137_s13 }
 0x248   : > { %p1330_p8 = pnand %p1333_p7, %p1596_p9 }
 0x24a   : > { %1484 = dma.done.wait (!%p1330_p8), %s1138_s15, 256  }
 0x24b   : > { %1486 = vsyncadd (!%p1330_p8), %s1138_s15, 4294967040  ;;  %s18_s23 = sadd.s32 1, %s1509_s23   ;;  %s1890_s18 = smov %s1493_s19 }
 0x24c   : > { %p15_p10 = scmp.ge.s32.totalorder %s18_s23, 5   ;;  %s1891_s19 = smov %s1497_s20 }
 0x24d   : > { %s1892_s20 = smov %s1594_s30  ;;  %s1893_s21 = smov %s1505_s22 }
 0x24e   : > { %s1894_s22 = smov %s1896_s26  ;;  %17 = sbr.rel (!%p15_p10) target bundleno = 4 (0x4), region = 131 }
 0x255   :  { %1143 = vsyncpa [#allocation5], 1 }
 0x256   :  { %1145 = vsyncpa [#allocation5 + $0x1], 1 }

</bundles_post_ra>
